<compile_context>
chip_gen: v5e
topology: v5e:2x2
jax: 0.10.0
libtpu: 0.0.40
codegen_flags: <defaults>
</compile_context>

<pallas_src>
import jax
import jax.numpy as jnp
from jax.experimental import pallas as pl
from jax.experimental.pallas import tpu as pltpu

block_size = 8
n_embd = 32
n_head = 4
head_dim = n_embd // n_head


def mha_kernel(x_ref, wqkv_ref, wo_ref, mask_ref, o_ref):
    BB, T, C = x_ref.shape
    H, hd = n_head, head_dim
    BT = BB * T

    # (BB, T, C) -> (BT, C): leading-dim collapse only (layout preserving,
    # T == 8 == sublane tile).
    x2d = x_ref[...].reshape(BT, C)

    # Fused QKV projection: a single lane-dense matmul (contraction depth C,
    # lane width 3C).  The attention scale is already folded into the Q columns.
    qkv = jnp.dot(x2d, wqkv_ref[...],
                  preferred_element_type=jnp.float32)        # (BT, 3C)

    # Split heads: static lane slices (XLU slot, otherwise idle here) plus
    # leading-dim-only reshapes.  Result has a fused (head, batch) leading axis
    # of size H*BB with n = h*BB + b, so the score tensor stays linear in the
    # fused batch (no block-diagonal waste).
    def split_heads(m2d):                                    # (BT, C) -> (H*BB, T, hd)
        cols = [m2d[:, h * hd:(h + 1) * hd] for h in range(H)]
        return jnp.stack(cols, axis=0).reshape(H * BB, T, hd)

    q = split_heads(qkv[:, 0 * C:1 * C])                     # scale already folded in
    k = split_heads(qkv[:, 1 * C:2 * C])
    v = split_heads(qkv[:, 2 * C:3 * C])

    # Scores: contract the last dims directly (no explicit k transpose),
    # batched over the fused (head, batch) axis.
    s = jnp.einsum('nqd,nkd->nqk', q, k,
                   preferred_element_type=jnp.float32)       # (H*BB, T, T)

    # Precomputed causal bias: 0 on allowed entries, -1e30 on masked ones.
    # (PyTorch's '+1.0' on allowed entries is dropped: softmax is row-shift
    # invariant, so the probabilities are bit-for-bit equivalent.)
    s = s + mask_ref[...][None]

    # Numerically stable softmax with an EXACT divide (tiny denominator tensor;
    # approximate reciprocal buys nothing here and costs accuracy).
    m = jnp.max(s, axis=-1, keepdims=True)
    p = jnp.exp(s - m)
    p = p / jnp.sum(p, axis=-1, keepdims=True)

    out_h = jnp.einsum('nqk,nkd->nqd', p, v,
                       preferred_element_type=jnp.float32)   # (H*BB, T, hd)

    # Merge heads back onto lanes with one lane-concat (-> (BT, C)), then a
    # single (BT,C)@(C,C) output-projection matmul (contraction depth C,
    # replacing 4 depth-8 matmuls + a VPU sum over heads).
    merged = jnp.concatenate(
        [out_h[h * BB:(h + 1) * BB].reshape(BT, hd) for h in range(H)],
        axis=-1)                                             # (BT, C)
    y = jnp.dot(merged, wo_ref[...],
                preferred_element_type=jnp.float32)          # (BT, C)

    o_ref[...] = y.reshape(BB, T, C).astype(o_ref.dtype)


def prepare_weights(w_attn_pt, w_proj_pt):
    """One-time host-side weight/mask prep.  Call ONCE and cache the results;
    this is deliberately outside the per-call hot path.

    w_attn_pt: (3C, C) and w_proj_pt: (C, C), PyTorch nn.Linear layout
    (out_features, in_features)."""
    C, hd = n_embd, head_dim
    scale = hd ** -0.5
    w_qkv = jnp.asarray(w_attn_pt).T                         # (C, 3C): [q | k | v]
    w_qkv = jnp.concatenate(
        [w_qkv[:, :C] * scale, w_qkv[:, C:]], axis=-1)       # fold 1/sqrt(hd) into Q
    w_o = jnp.asarray(w_proj_pt).T                           # (C, C)
    tril = jnp.tril(jnp.ones((block_size, block_size), dtype=bool))
    mask_bias = jnp.where(tril, 0.0, -1e30).astype(jnp.float32)
    return w_qkv, w_o, mask_bias


def _pick_batch_block(B):
    """v7x has 2 TensorCores/chip: give each core ONE fused grid step (BB=B/2).
    Single-TC chips (v5e/v6e): fuse the whole batch into one grid step to avoid
    the ~0.35 us/step pipeline overhead."""
    try:
        kind = jax.devices()[0].device_kind.lower()
    except Exception:
        kind = ""
    if ("v7" in kind or "7x" in kind) and B % 2 == 0:
        return max(B // 2, 1)
    return B


def multi_head_attention(x, w_qkv, w_o, mask_bias, *, batch_block=None):
    """x: (B, T, C).  w_qkv: (C, 3C), w_o: (C, C), mask_bias: (T, T) --
    as produced by prepare_weights()."""
    B, T, C = x.shape
    assert C == n_embd and C == n_head * head_dim
    assert T == block_size

    BB = _pick_batch_block(B) if batch_block is None else batch_block
    assert B % BB == 0
    grid = (B // BB,)

    return pl.pallas_call(
        mha_kernel,
        out_shape=jax.ShapeDtypeStruct((B, T, C), x.dtype),
        grid_spec=pltpu.PrefetchScalarGridSpec(
            num_scalar_prefetch=0,
            grid=grid,
            in_specs=[
                pl.BlockSpec((BB, T, C), lambda b: (b, 0, 0)),
                pl.BlockSpec((C, 3 * C), lambda b: (0, 0)),
                pl.BlockSpec((C, C), lambda b: (0, 0)),
                pl.BlockSpec((T, T), lambda b: (0, 0)),
            ],
            out_specs=pl.BlockSpec((BB, T, C), lambda b: (b, 0, 0)),
        ),
        compiler_params=pltpu.CompilerParams(
            dimension_semantics=("parallel",)),
    )(x, w_qkv, w_o, mask_bias)


if __name__ == "__main__":
    key = jax.random.PRNGKey(0)
    kx, ka, kp = jax.random.split(key, 3)

    B, T, C = 2, block_size, n_embd
    x = jax.random.normal(kx, (B, T, C), dtype=jnp.float32)

    # PyTorch nn.Linear weights are (out_features, in_features).
    w_attn_pt = (C ** -0.5) * jax.random.normal(ka, (3 * C, C), dtype=jnp.float32)
    w_proj_pt = (C ** -0.5) * jax.random.normal(kp, (C, C), dtype=jnp.float32)

    # One-time prep (cached), then the kernel call.
    w_qkv, w_o, mask_bias = prepare_weights(w_attn_pt, w_proj_pt)
    out = multi_head_attention(x, w_qkv, w_o, mask_bias)
    jax.block_until_ready(out)

    # Pure-JAX reference (PyTorch eval-mode semantics, no dropout).
    qkv = x @ w_attn_pt.T
    q, k, v = jnp.split(qkv, 3, axis=-1)
    q = q.reshape(B, T, n_head, head_dim).transpose(0, 2, 1, 3)
    k = k.reshape(B, T, n_head, head_dim).transpose(0, 2, 1, 3)
    v = v.reshape(B, T, n_head, head_dim).transpose(0, 2, 1, 3)
    s = jnp.einsum("bhqd,bhkd->bhqk", q, k) * (head_dim ** -0.5)
    mask = jnp.tril(jnp.ones((T, T), dtype=bool))
    s = jnp.where(mask[None, None], s, -jnp.inf)
    p = jax.nn.softmax(s, axis=-1)
    ref = jnp.einsum("bhqk,bhkd->bhqd", p, v).transpose(0, 2, 1, 3).reshape(B, T, C)
    ref = ref @ w_proj_pt.T

    assert jnp.allclose(out, ref, atol=1e-5, rtol=1e-5), "mismatch vs JAX reference"
    print("KERNEL_OK")
</pallas_src>

<mosaic_0001>
module attributes {stable_mosaic.version = 11 : i64} {
  func.func @mha_kernel(%arg0: i32, %arg1: memref<2x8x32xf32, #tpu.memory_space<vmem>>, %arg2: memref<32x96xf32, #tpu.memory_space<vmem>>, %arg3: memref<32x32xf32, #tpu.memory_space<vmem>>, %arg4: memref<8x8xf32, #tpu.memory_space<vmem>>, %arg5: memref<2x8x32xf32, #tpu.memory_space<vmem>>) attributes {dimension_semantics = [#tpu.dimension_semantics<parallel>], iteration_bounds = array<i64: 1>, scalar_prefetch = 0 : i64, scratch_operands = 0 : i64, tpu.core_type = #tpu.core_type<tc>, window_params = [{transform_indices = @transform_0, window_bounds = array<i64: 2, 8, 32>}, {pipeline_mode = #tpu.pipeline_mode<synchronous>, transform_indices = @transform_1, window_bounds = array<i64: 32, 96>}, {pipeline_mode = #tpu.pipeline_mode<synchronous>, transform_indices = @transform_2, window_bounds = array<i64: 32, 32>}, {pipeline_mode = #tpu.pipeline_mode<synchronous>, transform_indices = @transform_3, window_bounds = array<i64: 8, 8>}, {transform_indices = @transform_4, window_bounds = array<i64: 2, 8, 32>}]} {
    %c0 = arith.constant 0 : index
    %c0_0 = arith.constant 0 : index
    %c0_1 = arith.constant 0 : index
    %0 = vector.load %arg1[%c0, %c0_0, %c0_1] : memref<2x8x32xf32, #tpu.memory_space<vmem>>, vector<2x8x32xf32>
    %1 = vector.shape_cast %0 : vector<2x8x32xf32> to vector<16x32xf32>
    %c0_2 = arith.constant 0 : index
    %c0_3 = arith.constant 0 : index
    %2 = vector.load %arg2[%c0_2, %c0_3] : memref<32x96xf32, #tpu.memory_space<vmem>>, vector<32x96xf32>
    %cst = arith.constant dense<0.000000e+00> : vector<16x96xf32>
    %3 = tpu.matmul %1, %2, %cst {dimension_numbers = #tpu.dot_dimension_numbers<[1], [0], [0], [1], [0, 0, 1, 1], [], []>} : vector<16x32xf32>, vector<32x96xf32>, vector<16x96xf32> -> vector<16x96xf32>
    %4 = vector.extract_strided_slice %3 {offsets = [0, 0], sizes = [16, 32], strides = [1, 1]} : vector<16x96xf32> to vector<16x32xf32>
    %5 = vector.extract_strided_slice %4 {offsets = [0, 0], sizes = [16, 8], strides = [1, 1]} : vector<16x32xf32> to vector<16x8xf32>
    %6 = vector.extract_strided_slice %4 {offsets = [0, 8], sizes = [16, 8], strides = [1, 1]} : vector<16x32xf32> to vector<16x8xf32>
    %7 = vector.extract_strided_slice %4 {offsets = [0, 16], sizes = [16, 8], strides = [1, 1]} : vector<16x32xf32> to vector<16x8xf32>
    %8 = vector.extract_strided_slice %4 {offsets = [0, 24], sizes = [16, 8], strides = [1, 1]} : vector<16x32xf32> to vector<16x8xf32>
    %9 = vector.shape_cast %5 : vector<16x8xf32> to vector<1x16x8xf32>
    %10 = vector.shape_cast %6 : vector<16x8xf32> to vector<1x16x8xf32>
    %11 = vector.shape_cast %7 : vector<16x8xf32> to vector<1x16x8xf32>
    %12 = vector.shape_cast %8 : vector<16x8xf32> to vector<1x16x8xf32>
    %13 = tpu.concatenate %9, %10, %11, %12 in 0 : vector<1x16x8xf32>, vector<1x16x8xf32>, vector<1x16x8xf32>, vector<1x16x8xf32> -> vector<4x16x8xf32>
    %14 = vector.shape_cast %13 : vector<4x16x8xf32> to vector<8x8x8xf32>
    %15 = vector.extract_strided_slice %3 {offsets = [0, 32], sizes = [16, 32], strides = [1, 1]} : vector<16x96xf32> to vector<16x32xf32>
    %16 = vector.extract_strided_slice %15 {offsets = [0, 0], sizes = [16, 8], strides = [1, 1]} : vector<16x32xf32> to vector<16x8xf32>
    %17 = vector.extract_strided_slice %15 {offsets = [0, 8], sizes = [16, 8], strides = [1, 1]} : vector<16x32xf32> to vector<16x8xf32>
    %18 = vector.extract_strided_slice %15 {offsets = [0, 16], sizes = [16, 8], strides = [1, 1]} : vector<16x32xf32> to vector<16x8xf32>
    %19 = vector.extract_strided_slice %15 {offsets = [0, 24], sizes = [16, 8], strides = [1, 1]} : vector<16x32xf32> to vector<16x8xf32>
    %20 = vector.shape_cast %16 : vector<16x8xf32> to vector<1x16x8xf32>
    %21 = vector.shape_cast %17 : vector<16x8xf32> to vector<1x16x8xf32>
    %22 = vector.shape_cast %18 : vector<16x8xf32> to vector<1x16x8xf32>
    %23 = vector.shape_cast %19 : vector<16x8xf32> to vector<1x16x8xf32>
    %24 = tpu.concatenate %20, %21, %22, %23 in 0 : vector<1x16x8xf32>, vector<1x16x8xf32>, vector<1x16x8xf32>, vector<1x16x8xf32> -> vector<4x16x8xf32>
    %25 = vector.shape_cast %24 : vector<4x16x8xf32> to vector<8x8x8xf32>
    %26 = vector.extract_strided_slice %3 {offsets = [0, 64], sizes = [16, 32], strides = [1, 1]} : vector<16x96xf32> to vector<16x32xf32>
    %27 = vector.extract_strided_slice %26 {offsets = [0, 0], sizes = [16, 8], strides = [1, 1]} : vector<16x32xf32> to vector<16x8xf32>
    %28 = vector.extract_strided_slice %26 {offsets = [0, 8], sizes = [16, 8], strides = [1, 1]} : vector<16x32xf32> to vector<16x8xf32>
    %29 = vector.extract_strided_slice %26 {offsets = [0, 16], sizes = [16, 8], strides = [1, 1]} : vector<16x32xf32> to vector<16x8xf32>
    %30 = vector.extract_strided_slice %26 {offsets = [0, 24], sizes = [16, 8], strides = [1, 1]} : vector<16x32xf32> to vector<16x8xf32>
    %31 = vector.shape_cast %27 : vector<16x8xf32> to vector<1x16x8xf32>
    %32 = vector.shape_cast %28 : vector<16x8xf32> to vector<1x16x8xf32>
    %33 = vector.shape_cast %29 : vector<16x8xf32> to vector<1x16x8xf32>
    %34 = vector.shape_cast %30 : vector<16x8xf32> to vector<1x16x8xf32>
    %35 = tpu.concatenate %31, %32, %33, %34 in 0 : vector<1x16x8xf32>, vector<1x16x8xf32>, vector<1x16x8xf32>, vector<1x16x8xf32> -> vector<4x16x8xf32>
    %36 = vector.shape_cast %35 : vector<4x16x8xf32> to vector<8x8x8xf32>
    "tpu.trace_start"() <{level = 10 : i32, message = "nqd,nkd->nqk"}> : () -> ()
    %cst_4 = arith.constant dense<0.000000e+00> : vector<8x8x8xf32>
    %37 = tpu.matmul %14, %25, %cst_4 {dimension_numbers = #tpu.dot_dimension_numbers<[2], [2], [1], [1], [0, 0, 0, 1, 1, 1], [0], [0]>} : vector<8x8x8xf32>, vector<8x8x8xf32>, vector<8x8x8xf32> -> vector<8x8x8xf32>
    "tpu.trace_stop"() : () -> ()
    %c0_5 = arith.constant 0 : index
    %c0_6 = arith.constant 0 : index
    %38 = vector.load %arg4[%c0_5, %c0_6] : memref<8x8xf32, #tpu.memory_space<vmem>>, vector<8x8xf32>
    %39 = vector.shape_cast %38 : vector<8x8xf32> to vector<1x8x8xf32>
    %40 = vector.broadcast %39 : vector<1x8x8xf32> to vector<8x8x8xf32>
    %41 = arith.addf %37, %40 : vector<8x8x8xf32>
    %cst_7 = arith.constant dense<0xFF800000> : vector<8x8xf32>
    %42 = vector.multi_reduction <maximumf>, %41, %cst_7 [2] : vector<8x8x8xf32> to vector<8x8xf32>
    %43 = vector.shape_cast %42 : vector<8x8xf32> to vector<8x8x1xf32>
    %44 = vector.broadcast %43 : vector<8x8x1xf32> to vector<8x8x8xf32>
    %45 = arith.subf %41, %44 : vector<8x8x8xf32>
    %46 = math.exp %45 : vector<8x8x8xf32>
    %cst_8 = arith.constant dense<0.000000e+00> : vector<8x8xf32>
    %47 = vector.multi_reduction <add>, %46, %cst_8 [2] : vector<8x8x8xf32> to vector<8x8xf32>
    %48 = vector.shape_cast %47 : vector<8x8xf32> to vector<8x8x1xf32>
    %49 = vector.broadcast %48 : vector<8x8x1xf32> to vector<8x8x8xf32>
    %50 = arith.divf %46, %49 : vector<8x8x8xf32>
    "tpu.trace_start"() <{level = 10 : i32, message = "nqk,nkd->nqd"}> : () -> ()
    %cst_9 = arith.constant dense<0.000000e+00> : vector<8x8x8xf32>
    %51 = tpu.matmul %50, %36, %cst_9 {dimension_numbers = #tpu.dot_dimension_numbers<[2], [1], [1], [2], [0, 0, 0, 1, 1, 2], [0], [0]>} : vector<8x8x8xf32>, vector<8x8x8xf32>, vector<8x8x8xf32> -> vector<8x8x8xf32>
    "tpu.trace_stop"() : () -> ()
    %52 = vector.extract_strided_slice %51 {offsets = [0, 0, 0], sizes = [2, 8, 8], strides = [1, 1, 1]} : vector<8x8x8xf32> to vector<2x8x8xf32>
    %53 = vector.shape_cast %52 : vector<2x8x8xf32> to vector<16x8xf32>
    %54 = vector.extract_strided_slice %51 {offsets = [2, 0, 0], sizes = [2, 8, 8], strides = [1, 1, 1]} : vector<8x8x8xf32> to vector<2x8x8xf32>
    %55 = vector.shape_cast %54 : vector<2x8x8xf32> to vector<16x8xf32>
    %56 = vector.extract_strided_slice %51 {offsets = [4, 0, 0], sizes = [2, 8, 8], strides = [1, 1, 1]} : vector<8x8x8xf32> to vector<2x8x8xf32>
    %57 = vector.shape_cast %56 : vector<2x8x8xf32> to vector<16x8xf32>
    %58 = vector.extract_strided_slice %51 {offsets = [6, 0, 0], sizes = [2, 8, 8], strides = [1, 1, 1]} : vector<8x8x8xf32> to vector<2x8x8xf32>
    %59 = vector.shape_cast %58 : vector<2x8x8xf32> to vector<16x8xf32>
    %60 = tpu.concatenate %53, %55, %57, %59 in 1 : vector<16x8xf32>, vector<16x8xf32>, vector<16x8xf32>, vector<16x8xf32> -> vector<16x32xf32>
    %c0_10 = arith.constant 0 : index
    %c0_11 = arith.constant 0 : index
    %61 = vector.load %arg3[%c0_10, %c0_11] : memref<32x32xf32, #tpu.memory_space<vmem>>, vector<32x32xf32>
    %cst_12 = arith.constant dense<0.000000e+00> : vector<16x32xf32>
    %62 = tpu.matmul %60, %61, %cst_12 {dimension_numbers = #tpu.dot_dimension_numbers<[1], [0], [0], [1], [0, 0, 1, 1], [], []>} : vector<16x32xf32>, vector<32x32xf32>, vector<16x32xf32> -> vector<16x32xf32>
    %63 = vector.shape_cast %62 : vector<16x32xf32> to vector<2x8x32xf32>
    %c0_13 = arith.constant 0 : index
    %c0_14 = arith.constant 0 : index
    %c0_15 = arith.constant 0 : index
    %64 = vector.load %arg5[%c0_13, %c0_14, %c0_15] : memref<2x8x32xf32, #tpu.memory_space<vmem>>, vector<2x8x32xf32>
    tpu.vector_store %arg5[%c0_13, %c0_14, %c0_15], %63 {strides = array<i32>} : memref<2x8x32xf32, #tpu.memory_space<vmem>>, vector<2x8x32xf32>,
    return
  }
  func.func @transform_0(%arg0: i32) -> (i32, i32, i32) {
    %c0_i32 = arith.constant 0 : i32
    %c0_i32_0 = arith.constant 0 : i32
    %c0_i32_1 = arith.constant 0 : i32
    return %arg0, %c0_i32, %c0_i32_0 : i32, i32, i32
  }
  func.func @transform_1(%arg0: i32) -> (i32, i32) {
    %c0_i32 = arith.constant 0 : i32
    %c0_i32_0 = arith.constant 0 : i32
    %c0_i32_1 = arith.constant 0 : i32
    return %c0_i32, %c0_i32_0 : i32, i32
  }
  func.func @transform_2(%arg0: i32) -> (i32, i32) {
    %c0_i32 = arith.constant 0 : i32
    %c0_i32_0 = arith.constant 0 : i32
    %c0_i32_1 = arith.constant 0 : i32
    return %c0_i32, %c0_i32_0 : i32, i32
  }
  func.func @transform_3(%arg0: i32) -> (i32, i32) {
    %c0_i32 = arith.constant 0 : i32
    %c0_i32_0 = arith.constant 0 : i32
    %c0_i32_1 = arith.constant 0 : i32
    return %c0_i32, %c0_i32_0 : i32, i32
  }
  func.func @transform_4(%arg0: i32) -> (i32, i32, i32) {
    %c0_i32 = arith.constant 0 : i32
    %c0_i32_0 = arith.constant 0 : i32
    %c0_i32_1 = arith.constant 0 : i32
    return %arg0, %c0_i32, %c0_i32_0 : i32, i32, i32
  }
}

</mosaic_0001>

<bundles_post_ra>
// kernel: tpu_custom_call.1
= control target key start
LH: loop header
LB: loop body
LE: loop exit
PB: predicated region body
PF: predicated region fallthrough
CT: control target
= control target key end

     0   :  { %9 = vsyncpa [#allocation3], 0  ;;  %s1276_s0 = inlined_call_operand.hbm [shape: f32[2,8,32], index: 0, kind: input, shape index: {}]   ;;  %s1277_s1 = inlined_call_operand.hbm [shape: f32[32,96], index: 1, kind: input, shape index: {}]   ;;  %s1278_s2 = inlined_call_operand.hbm [shape: f32[32,32], index: 2, kind: input, shape index: {}]   ;;  %s1279_s3 = inlined_call_operand.hbm [shape: f32[8,8], index: 3, kind: input, shape index: {}]   ;;  %s1280_s4 = inlined_call_operand.hbm [shape: f32[2,8,32], index: 4, kind: output, shape index: {}]  }
   0x1   :  { %10 = vsyncpa [#allocation6], 0 }
   0x2   :  { %11 = vsyncpa [#allocation9], 0 }
   0x3   :  { %12 = vsyncpa [#allocation4], 0  ;;  %s30_s17 = sshll.u32 %s1277_s1, 4  ;;  %s1044_s18 = smov [#allocation5]   ;;  %s31_s17 = int_to_ptr.hbm [resolvable:$true] %s30_s17 }
   0x4   :  { %s32_s19 = sshll.u32 %s1044_s18, 4  ;;  %s17_s22 = sshll.u32 %s1276_s0, 4  ;;  %s33_s19 = int_to_ptr.vmem [resolvable:$true] %s32_s19  ;;  %s18_s22 = int_to_ptr.hbm [resolvable:$true] %s17_s22 }
   0x5   :  { %s1045_s23 = smov 128   ;;  %s1046_s24 = smov 8  }
   0x6   :  { %38 = dma.hbm_to_vmem [thread:$0]  %s31_s17, 512, %s33_s19, [#allocation6], %s1045_s23, %s1045_s23, %s1046_s24  }
   0x7   :  { %s1047_s25 = smov [#allocation2]   ;;  %s43_s1 = sshll.u32 %s1278_s2, 4  ;;  %s44_s1 = int_to_ptr.hbm [resolvable:$true] %s43_s1 }
   0x8   :  { %s19_s26 = sshll.u32 %s1047_s25, 4  ;;  %s57_s30 = sshll.u32 %s1279_s3, 4  ;;  %s20_s26 = int_to_ptr.vmem [resolvable:$true] %s19_s26  ;;  %s58_s30 = int_to_ptr.hbm [resolvable:$true] %s57_s30 }
   0x9   :  { %25 = dma.hbm_to_vmem [thread:$0]  %s18_s22, 256, %s20_s26, [#allocation3], %s1045_s23, %s1045_s23, %s1046_s24  }
   0xa   :  { %s1048_s5 = smov [#allocation7]   ;;  %s1049_s7 = smov [#allocation8]  }
   0xb   :  { %s45_s6 = sshll.u32 %s1048_s5, 4  ;;  %s59_s2 = sshll.u32 %s1049_s7, 4  ;;  %s46_s6 = int_to_ptr.vmem [resolvable:$true] %s45_s6  ;;  %s60_s2 = int_to_ptr.vmem [resolvable:$true] %s59_s2 }
   0xc   :  { %51 = dma.hbm_to_vmem [thread:$0]  %s44_s1, 512, %s46_s6, [#allocation6], %s1045_s23, %s1045_s23, %s1046_s24  }
   0xd   :  { %62 = dma.hbm_to_vmem [thread:$0]  %s58_s30, 128, %s60_s2, [#allocation9]  }
   0xe   :  { %1036 = dma.done.wait [#allocation3], 256  }
   0xf   :  { %1037 = vsyncadd [#allocation3], 4294967040 }
  0x10   :  { %1038 = dma.done.wait [#allocation6], 1024  }
  0x11   :  { %1039 = vsyncadd [#allocation6], 4294966272 }
  0x12   :  { %1040 = dma.done.wait [#allocation9], 128  }
  0x13   :  { %1041 = vsyncadd [#allocation9], 4294967168  ;;  %v84_v0 = vld [vmem:[#allocation5 + $0x18] sm:$0xff]  ;;  %v83_v1 = vld [vmem:[#allocation5 + $0x10] sm:$0xff]  ;;  %vm85_vm0 = vcmask 261120   ;;  %s1050_s3 = smov 104  }
  0x14   :  { %104 = vmatpush.msra.mxu0 %v84_v0  ;;  %v82_v2 = vld [vmem:[#allocation5 + $0x8] sm:$0xff]  ;;  %v81_v3 = vld [vmem:[#allocation5] sm:$0xff]  ;;  %v79_v4 = vld [vmem:[#allocation2] sm:$0xff]  ;;  %s1051_s8 = smov 112   ;;  %s1052_s9 = smov 120   ;;  %vm132_vm1 = vcmask 64512  }
  0x15   :  { %v80_v5 = vld [vmem:[#allocation2 + $0x8] sm:$0xff]  ;;  %s1053_s10 = smov 96   ;;  %v129_v22 = vld [vmem:[#allocation8] sm:$0xff]  ;;  %s1054_s11 = smov 64  }
  0x16   :  { %105 = vmatpush.msra.mxu0 %v83_v1  ;;  %s1055_s12 = smov 16   ;;  %s1056_s13 = smov 24  }
  0x17   :  { %s1057_s14 = smov [#allocation10]   ;;  %s812_s18 = sshll.u32 %s1280_s4, 4  ;;  %s813_s18 = int_to_ptr.hbm [resolvable:$true] %s812_s18 }
  0x18   :  { %106 = vmatpush.msra.mxu0 %v82_v2  ;;  %s810_s15 = sshll.u32 %s1057_s14, 4  ;;  %s811_s15 = int_to_ptr.vmem [resolvable:$true] %s810_s15 }
  0x1a   :  { %107 = vmatpush.msra.mxu0 %v81_v3 }
  0x1b   :  { %827 = vmatmul.msk.f32.vlgmr.msra.gmra.mxu0 %vm85_vm0, %v79_v4 }
  0x23   :  { %828 = vmatmul.msk.f32.gmra.mxu0 %vm85_vm0, %v80_v5 }
  0x98   :  { %v1106_v6 = vpop.f32.mrf.mxu0 }
  0x99   :  { %125 = vrot.lane.b32.xlu2 %v1106_v6, %s1050_s3  ;;  %121 = vrot.lane.b32.xlu0 %v1106_v6, %s1051_s8 }
  0xa0   :  { %v1110_v7 = vpop.f32.mrf.mxu0 }
  0xa1   :  { %117 = vrot.lane.b32.xlu0 %v1106_v6, %s1052_s9  ;;  %123 = vrot.lane.b32.xlu2 %v1110_v7, %s1051_s8 }
  0xa2   :  { %119 = vrot.lane.b32.xlu1 %v1110_v7, %s1052_s9 }
  0xa9   :  { %157 = vrot.lane.b32.xlu0 %v1110_v7, %s1053_s10 }
  0xaa   :  { %127 = vrot.lane.b32.xlu1 %v1110_v7, %s1050_s3 }
  0xb2   :  { %130 = vrot.lane.b32.xlu1 %v1106_v6, %s1053_s10 }
  0xf3   :  { %v1121_v9 = vpop.permute.xlu2 %125 }
  0xfb   :  { %v1129_v13 = vpop.permute.xlu2 %123 }
 0x10b   :  { %v1118_v8 = vpop.permute.xlu0 %121 }
 0x10c   :  { %235 = vrot.lane.b32.xlu2 %v1118_v8, %s1053_s10 }
 0x113   :  { %v1123_v10 = vpop.permute.xlu0 %117 }
 0x114   :  { %v1125_v11 = vpop.permute.xlu1 %119  ;;  %183 = vrot.lane.b32.xlu0 %v1123_v10, %s1053_s10  ;;  %v869_v43 = vpack.i.bf16 %v1123_v10, %v1106_v6 }
 0x115   :  { %209 = vrot.lane.b32.xlu1 %v1125_v11, %s1053_s10  ;;  %v874_v53 = vpack.i.bf16 %v1125_v11, %v1118_v8 }
 0x11b   :  { %v158_v12 = vpop.permute.xlu0 %157 }
 0x11c   :  { %v1131_v14 = vpop.permute.xlu1 %127  ;;  %287 = vrot.lane.b32.xlu0 %v1121_v9, %s1053_s10  ;;  %831 = vmatpush.xpose.msk.msra.mxu2 %vm132_vm1, %v158_v12 }
 0x11d   :  { %261 = vrot.lane.b32.xlu1 %v1129_v13, %s1053_s10  ;;  %313 = vrot.lane.b32.xlu2 %v1131_v14, %s1053_s10 }
 0x11f   :  { %832 = vmatmul.msk.f32.vlgmr.msra.gmra.mxu2 %vm132_vm1, %v1110_v7 }
 0x124   :  { %v131_v15 = vpop.permute.xlu1 %130 }
 0x125   :  { %829 = vmatpush.xpose.msk.msra.mxu1 %vm132_vm1, %v131_v15 }
 0x128   :  { %830 = vmatmul.msk.f32.vlgmr.msra.gmra.mxu1 %vm132_vm1, %v1106_v6 }
 0x166   :  { %v236_v16 = vpop.permute.xlu2 %235 }
 0x167   :  { %837 = vmatpush.xpose.msk.msrb.mxu2 %vm132_vm1, %v236_v16 }
 0x16a   :  { %838 = vmatmul.msk.f32.vlgmr.msrb.gmra.mxu2 %vm132_vm1, %v1118_v8 }
 0x177   :  { %v314_v17 = vpop.permute.xlu2 %313 }
 0x178   :  { %843 = vmatpush.xpose.msk.msra.mxu2 %vm132_vm1, %v314_v17 }
 0x17b   :  { %844 = vmatmul.msk.f32.vlgmr.msra.gmra.mxu2 %vm132_vm1, %v1131_v14 }
 0x186   :  { %v184_v18 = vpop.permute.xlu0 %183 }
 0x187   :  { %v210_v19 = vpop.permute.xlu1 %209  ;;  %833 = vmatpush.xpose.msk.msrb.mxu0 %vm132_vm1, %v184_v18 }
 0x188   :  { %835 = vmatpush.xpose.msk.msrb.mxu1 %vm132_vm1, %v210_v19 }
 0x18a   :  { %834 = vmatmul.msk.f32.vlgmr.msrb.gmra.mxu0 %vm132_vm1, %v1123_v10 }
 0x18b   :  { %836 = vmatmul.msk.f32.vlgmr.msrb.gmra.mxu1 %vm132_vm1, %v1125_v11 }
 0x18e   :  { %v288_v20 = vpop.permute.xlu0 %287 }
 0x18f   :  { %v262_v21 = vpop.permute.xlu1 %261  ;;  %841 = vmatpush.xpose.msk.msra.mxu1 %vm132_vm1, %v288_v20 }
 0x190   :  { %839 = vmatpush.xpose.msk.msra.mxu3 %vm132_vm1, %v262_v21 }
 0x193   :  { %840 = vmatmul.msk.f32.vlgmr.msra.gmra.mxu3 %vm132_vm1, %v1129_v13  ;;  %842 = vmatmul.msk.f32.vlgmr.msra.gmra.mxu1 %vm132_vm1, %v1121_v9 }
 0x1a2   :  { %v180_v26 = vpop.f32.mrf.mxu2 }
 0x1a3   :  { %v181_v39 = vadd.f32 %v180_v26, %v129_v22 }
 0x1a5   :  { %v154_v23 = vpop.f32.mrf.mxu1  ;;  %v342_v40 = vsel %vm132_vm1, %v181_v39, -inf }
 0x1a6   :  { %v155_v24 = vadd.f32 %v154_v23, %v129_v22 }
 0x1a8   :  { %v339_v25 = vsel %vm132_vm1, %v155_v24, -inf }
 0x1a9   :  { %340 = vmax.xlane.f32.xlu2 %v339_v25 }
 0x1ed   :  { %v258_v27 = vpop.f32.mrf.mxu2 }
 0x1ee   :  { %v259_v28 = vadd.f32 %v258_v27, %v129_v22 }
 0x1f0   :  { %v351_v29 = vsel %vm132_vm1, %v259_v28, -inf }
 0x1f1   :  { %352 = vmax.xlane.f32.xlu1 %v351_v29 }
 0x1fe   :  { %v336_v30 = vpop.f32.mrf.mxu2 }
 0x1ff   :  { %v337_v31 = vadd.f32 %v336_v30, %v129_v22 }
 0x201   :  { %v360_v32 = vsel %vm132_vm1, %v337_v31, -inf }
 0x202   :  { %361 = vmax.xlane.f32.xlu1 %v360_v32 }
 0x207   :  { %v206_v33 = vpop.f32.mrf.mxu0 }
 0x208   :  { %v207_v34 = vadd.f32 %v206_v33, %v129_v22  ;;  %v232_v35 = vpop.f32.mrf.mxu1 }
 0x209   :  { %v233_v36 = vadd.f32 %v232_v35, %v129_v22 }
 0x20a   :  { %v345_v37 = vsel %vm132_vm1, %v207_v34, -inf }
 0x20b   :  { %346 = vmax.xlane.f32.xlu0 %v345_v37  ;;  %v348_v38 = vsel %vm132_vm1, %v233_v36, -inf }
 0x20c   :  { %349 = vmax.xlane.f32.xlu2 %v348_v38 }
 0x210   :  { %v310_v50 = vpop.f32.mrf.mxu1 }
 0x211   :  { %v311_v51 = vadd.f32 %v310_v50, %v129_v22 }
 0x213   :  { %v357_v52 = vsel %vm132_vm1, %v311_v51, -inf }
 0x214   :  { %343 = vmax.xlane.f32.xlu2 %v342_v40 }
 0x216   :  { %v284_v41 = vpop.f32.mrf.mxu3 }
 0x217   :  { %v285_v42 = vadd.f32 %v284_v41, %v129_v22 }
 0x219   :  { %v354_v44 = vsel %vm132_vm1, %v285_v42, -inf }
 0x21b   :  { %870 = vrot.lane.b32.xlu1 %v869_v43, %s1054_s11 }
 0x21c   :  { %v341_v45 = vpop.xlane.xlu2 %340  ;;  %355 = vmax.xlane.f32.xlu2 %v354_v44 }
 0x21d   :  { %v363_v46 = vsub.f32 %v155_v24, %v341_v45 }
 0x21f   :  { %v371_v47 = vmul.f32 1.442695, %v363_v46  ;;  %v879_v46 = vpack.i.bf16 %v1121_v9, %v1110_v7 }
 0x221   :  { %884 = vpow2.f32 %v371_v47 }
 0x227   :  { %v1170_v48 = vpop.eup %884 }
 0x228   :  { %v387_v49 = vsel %vm132_vm1, %v1170_v48, 0.0 }
 0x229   :  { %388 = vadd.xlane.f32.xlu0 %v387_v49 }
 0x231   :  { %358 = vmax.xlane.f32.xlu0 %v357_v52 }
 0x245   :  { %875 = vrot.lane.b32.xlu0 %v874_v53, %s1054_s11 }
 0x264   :  { %v353_v54 = vpop.xlane.xlu1 %352 }
 0x265   :  { %v367_v55 = vsub.f32 %v259_v28, %v353_v54 }
 0x267   :  { %v379_v56 = vmul.f32 1.442695, %v367_v55 }
 0x269   :  { %886 = vpow2.f32 %v379_v56 }
 0x26f   :  { %v1178_v57 = vpop.eup %886 }
 0x270   :  { %v399_v58 = vsel %vm132_vm1, %v1178_v57, 0.0 }
 0x271   :  { %400 = vadd.xlane.f32.xlu2 %v399_v58 }
 0x275   :  { %v362_v59 = vpop.xlane.xlu1 %361 }
 0x276   :  { %v370_v62 = vsub.f32 %v337_v31, %v362_v59 }
 0x278   :  { %v385_v0 = vmul.f32 1.442695, %v370_v62 }
 0x27e   :  { %v347_v1 = vpop.xlane.xlu0 %346 }
 0x27f   :  { %v350_v60 = vpop.xlane.xlu2 %349  ;;  %v365_v5 = vsub.f32 %v207_v34, %v347_v1 }
 0x280   :  { %v366_v61 = vsub.f32 %v233_v36, %v350_v60 }
 0x281   :  { %v375_v11 = vmul.f32 1.442695, %v365_v5 }
 0x282   :  { %v377_v63 = vmul.f32 1.442695, %v366_v61 }
 0x284   :  { %888 = vpow2.f32 %v377_v63 }
 0x285   :  { %890 = vpow2.f32 %v385_v0 }
 0x287   :  { %v344_v2 = vpop.xlane.xlu2 %343 }
 0x288   :  { %v364_v3 = vsub.f32 %v181_v39, %v344_v2 }
 0x28a   :  { %v1182_v4 = vpop.eup %888  ;;  %v373_v6 = vmul.f32 1.442695, %v364_v3 }
 0x28b   :  { %v396_v8 = vsel %vm132_vm1, %v1182_v4, 0.0  ;;  %v1186_v17 = vpop.eup %890 }
 0x28c   :  { %892 = vpow2.f32 %v373_v6  ;;  %397 = vadd.xlane.f32.xlu0 %v396_v8  ;;  %v408_v22 = vsel %vm132_vm1, %v1186_v17, 0.0 }
 0x28d   :  { %v871_v10 = vpop.permute.xlu1 %870  ;;  %894 = vpow2.f32 %v375_v11 }
 0x28e   :  { %v873_v12 = vunpack.i.h.bf16 %v871_v10  ;;  %v872_v15 = vunpack.i.l.bf16 %v871_v10 }
 0x28f   :  { %v356_v16 = vpop.xlane.xlu2 %355 }
 0x290   :  { %v368_v18 = vsub.f32 %v285_v42, %v356_v16  ;;  %552 = vmatpush.msrb.mxu3 %v872_v15  ;;  %604 = vmatpush.msrb.mxu1 %v873_v12 }
 0x292   :  { %v1188_v19 = vpop.eup %892  ;;  %v381_v20 = vmul.f32 1.442695, %v368_v18 }
 0x293   :  { %v390_v21 = vsel %vm132_vm1, %v1188_v19, 0.0  ;;  %v1194_v23 = vpop.eup %894 }
 0x294   :  { %896 = vpow2.f32 %v381_v20  ;;  %391 = vadd.xlane.f32.xlu1 %v390_v21  ;;  %409 = vadd.xlane.f32.xlu0 %v408_v22  ;;  %v393_v25 = vsel %vm132_vm1, %v1194_v23, 0.0 }
 0x29a   :  { %v1196_v24 = vpop.eup %896 }
 0x29b   :  { %v402_v26 = vsel %vm132_vm1, %v1196_v24, 0.0 }
 0x29c   :  { %v389_v27 = vpop.xlane.xlu0 %388  ;;  %394 = vadd.xlane.f32.xlu1 %v393_v25  ;;  %403 = vadd.xlane.f32.xlu2 %v402_v26 }
 0x29d   :  { %898 = vrcp.f32 %v389_v27  ;;  %v422_v33 = vand.u32 2147483648, %v389_v27  ;;  %v420_v36 = vand.u32 2147483647, %v389_v27  ;;  %vm416_vm3 = vweird.f32 %v389_v27 }
 0x29f   :  { %v423_v38 = vor.u32 1.1754944e-38, %v422_v33  ;;  %vm421_vm5 = vcmp.eq.f32.partialorder %v420_v36, 8.507059e+37 }
 0x2a3   :  { %v899_v28 = vpop.eup %898 }
 0x2a4   :  { %v412_v29 = vmul.f32 %v899_v28, %v389_v27  ;;  %v359_v30 = vpop.xlane.xlu0 %358  ;;  %vm417_vm2 = vweird.f32 %v899_v28 }
 0x2a5   :  { %v369_v31 = vsub.f32 %v311_v51, %v359_v30  ;;  %vm418_vm4 = vmor %vm416_vm3, %vm417_vm2 }
 0x2a6   :  { %v413_v32 = vsub.f32 1.0, %v412_v29 }
 0x2a7   :  { %v383_v34 = vmul.f32 1.442695, %v369_v31 }
 0x2a8   :  { %v414_v35 = vmul.f32 %v899_v28, %v413_v32  ;;  %661 = vrot.lane.b32.xlu0 %v1129_v13, %s1054_s11 }
 0x2a9   :  { %900 = vpow2.f32 %v383_v34 }
 0x2aa   :  { %v415_v37 = vadd.f32 %v899_v28, %v414_v35 }
 0x2ac   :  { %v419_v39 = vsel %vm418_vm4, %v899_v28, %v415_v37 }
 0x2ad   :  { %v424_v40 = vsel %vm421_vm5, %v423_v38, %v419_v39 }
 0x2ae   :  { %v425_v41 = vmul.f32 %v1170_v48, %v424_v40 }
 0x2af   :  { %v1205_v42 = vpop.eup %900 }
 0x2b0   :  { %845 = vmatmul.msk.f32.vlgmr.msrb.gmra.mxu3 %vm132_vm1, %v425_v41  ;;  %v405_v43 = vsel %vm132_vm1, %v1205_v42, 0.0 }
 0x2b1   :  { %406 = vadd.xlane.f32.xlu2 %v405_v43 }
 0x2b5   :  { %713 = vrot.lane.b32.xlu1 %v1131_v14, %s1054_s11 }
 0x2b7   :  { %v876_v13 = vpop.permute.xlu0 %875 }
 0x2b8   :  { %v878_v44 = vunpack.i.h.bf16 %v876_v13  ;;  %v877_v45 = vunpack.i.l.bf16 %v876_v13 }
 0x2ba   :  { %630 = vmatpush.msrb.mxu2 %v878_v44  ;;  %656 = vmatpush.msra.mxu3 %v877_v45 }
 0x2c9   :  { %880 = vrot.lane.b32.xlu2 %v879_v46, %s1054_s11 }
 0x2e4   :  { %v401_v47 = vpop.xlane.xlu2 %400 }
 0x2e5   :  { %902 = vrcp.f32 %v401_v47  ;;  %v482_v51 = vand.u32 2147483648, %v401_v47  ;;  %v480_v53 = vand.u32 2147483647, %v401_v47  ;;  %vm476_vm7 = vweird.f32 %v401_v47 }
 0x2e7   :  { %v483_v54 = vor.u32 1.1754944e-38, %v482_v51  ;;  %vm481_vm9 = vcmp.eq.f32.partialorder %v480_v53, 8.507059e+37 }
 0x2eb   :  { %v903_v48 = vpop.eup %902 }
 0x2ec   :  { %v472_v49 = vmul.f32 %v903_v48, %v401_v47  ;;  %vm477_vm6 = vweird.f32 %v903_v48 }
 0x2ed   :  { %vm478_vm8 = vmor %vm476_vm7, %vm477_vm6 }
 0x2ee   :  { %v473_v50 = vsub.f32 1.0, %v472_v49 }
 0x2f0   :  { %v474_v52 = vmul.f32 %v903_v48, %v473_v50 }
 0x2f2   :  { %v475_v14 = vadd.f32 %v903_v48, %v474_v52 }
 0x2f4   :  { %v479_v55 = vsel %vm478_vm8, %v903_v48, %v475_v14 }
 0x2f5   :  { %v484_v56 = vsel %vm481_vm9, %v483_v54, %v479_v55 }
 0x2f6   :  { %v485_v7 = vmul.f32 %v1178_v57, %v484_v56 }
 0x2f8   :  { %849 = vmatmul.msk.f32.vlgmr.msra.gmra.mxu3 %vm132_vm1, %v485_v7 }
 0x2ff   :  { %v398_v9 = vpop.xlane.xlu0 %397 }
 0x300   :  { %904 = vrcp.f32 %v398_v9  ;;  %v467_v0 = vand.u32 2147483648, %v398_v9  ;;  %v465_v1 = vand.u32 2147483647, %v398_v9  ;;  %vm461_vm11 = vweird.f32 %v398_v9 }
 0x302   :  { %v468_v5 = vor.u32 1.1754944e-38, %v467_v0  ;;  %vm466_vm13 = vcmp.eq.f32.partialorder %v465_v1, 8.507059e+37 }
 0x306   :  { %v905_v58 = vpop.eup %904 }
 0x307   :  { %v457_v59 = vmul.f32 %v905_v58, %v398_v9  ;;  %v410_v60 = vpop.xlane.xlu0 %409  ;;  %v1217_v61 = vpop.xlane.xlu1 %391  ;;  %vm462_vm10 = vweird.f32 %v905_v58 }
 0x308   :  { %906 = vrcp.f32 %v410_v60  ;;  %vm463_vm12 = vmor %vm461_vm11, %vm462_vm10  ;;  %vm521_vm2 = vweird.f32 %v410_v60  ;;  %v527_v31 = vand.u32 2147483648, %v410_v60  ;;  %v525_v33 = vand.u32 2147483647, %v410_v60 }
 0x309   :  { %v458_v62 = vsub.f32 1.0, %v457_v59  ;;  %908 = vrcp.f32 %v1217_v61  ;;  %v437_v47 = vand.u32 2147483648, %v1217_v61  ;;  %vm431_vm9 = vweird.f32 %v1217_v61 }
 0x30a   :  { %v528_v40 = vor.u32 1.1754944e-38, %v527_v31  ;;  %vm526_vm7 = vcmp.eq.f32.partialorder %v525_v33, 8.507059e+37  ;;  %v435_v48 = vand.u32 2147483647, %v1217_v61 }
 0x30b   :  { %v459_v63 = vmul.f32 %v905_v58, %v458_v62  ;;  %v438_v52 = vor.u32 1.1754944e-38, %v437_v47 }
 0x30c   :  { %vm436_vm11 = vcmp.eq.f32.partialorder %v435_v48, 8.507059e+37 }
 0x30d   :  { %v460_v2 = vadd.f32 %v905_v58, %v459_v63 }
 0x30e   :  { %v907_v3 = vpop.eup %906 }
 0x30f   :  { %v464_v57 = vsel %vm463_vm12, %v905_v58, %v460_v2  ;;  %v395_v6 = vpop.xlane.xlu1 %394  ;;  %v517_v10 = vmul.f32 %v907_v3, %v410_v60  ;;  %v1220_v11 = vpop.xlane.xlu2 %403  ;;  %vm522_vm14 = vweird.f32 %v907_v3 }
 0x310   :  { %v469_v8 = vsel %vm466_vm13, %v468_v5, %v464_v57  ;;  %910 = vrcp.f32 %v395_v6  ;;  %v909_v15 = vpop.eup %908  ;;  %v452_v27 = vand.u32 2147483648, %v395_v6  ;;  %vm1228_vm3 = vmor %vm521_vm2, %vm522_vm14  ;;  %vm446_vm4 = vweird.f32 %v395_v6 }
 0x311   :  { %v470_v12 = vmul.f32 %v1182_v4, %v469_v8  ;;  %v518_v16 = vsub.f32 1.0, %v517_v10  ;;  %912 = vrcp.f32 %v1220_v11  ;;  %v427_v20 = vmul.f32 %v909_v15, %v1217_v61 }
 0x312   :  { %v450_v4 = vand.u32 2147483647, %v395_v6  ;;  %v453_v37 = vor.u32 1.1754944e-38, %v452_v27  ;;  %vm432_vm8 = vweird.f32 %v909_v15  ;;  %v497_v7 = vand.u32 2147483648, %v1220_v11  ;;  %v771_v27 = vld [vmem:[#allocation7] sm:$0xff] }
 0x313   :  { %848 = vmatmul.msk.f32.vlgmr.msrb.gmra.mxu2 %vm132_vm1, %v470_v12  ;;  %v519_v21 = vmul.f32 %v907_v3, %v518_v16  ;;  %v428_v26 = vsub.f32 1.0, %v427_v20  ;;  %vm433_vm10 = vmor %vm431_vm9, %vm432_vm8  ;;  %vm491_vm13 = vweird.f32 %v1220_v11  ;;  %v495_v58 = vand.u32 2147483647, %v1220_v11 }
 0x314   :  { %vm451_vm6 = vcmp.eq.f32.partialorder %v450_v4, 8.507059e+37 }
 0x315   :  { %v520_v29 = vadd.f32 %v907_v3, %v519_v21  ;;  %v429_v35 = vmul.f32 %v909_v15, %v428_v26  ;;  %vm496_vm2 = vcmp.eq.f32.partialorder %v495_v58, 8.507059e+37  ;;  %v772_v26 = vld [vmem:[#allocation7 + $0x8] sm:$0xff] }
 0x316   :  { %v911_v18 = vpop.eup %910 }
 0x317   :  { %v442_v22 = vmul.f32 %v911_v18, %v395_v6  ;;  %v1226_v28 = vpop.eup %912  ;;  %vm447_vm15 = vweird.f32 %v911_v18  ;;  %v524_v38 = vsel %vm1228_vm3, %v907_v3, %v520_v29  ;;  %v430_v44 = vadd.f32 %v909_v15, %v429_v35 }
 0x318   :  { %v487_v36 = vmul.f32 %v1226_v28, %v1220_v11  ;;  %vm448_vm5 = vmor %vm446_vm4, %vm447_vm15  ;;  %v529_v13 = vsel %vm526_vm7, %v528_v40, %v524_v38  ;;  %vm492_vm12 = vweird.f32 %v1226_v28  ;;  %v498_v3 = vor.u32 1.1754944e-38, %v497_v7 }
 0x319   :  { %v443_v25 = vsub.f32 1.0, %v442_v22  ;;  %v530_v50 = vmul.f32 %v1186_v17, %v529_v13  ;;  %v434_v51 = vsel %vm433_vm10, %v909_v15, %v430_v44  ;;  %vm1250_vm14 = vmor %vm491_vm13, %vm492_vm12  ;;  %vm768_vm7 = vcmask 195584  }
 0x31a   :  { %v488_v45 = vsub.f32 1.0, %v487_v36  ;;  %v439_v14 = vsel %vm436_vm11, %v438_v52, %v434_v51  ;;  %v662_v0 = vpop.permute.xlu0 %661 }
 0x31b   :  { %v444_v30 = vmul.f32 %v911_v18, %v443_v25  ;;  %v440_v60 = vmul.f32 %v1188_v19, %v439_v14  ;;  %v773_v25 = vld [vmem:[#allocation7 + $0x10] sm:$0xff] }
 0x31d   :  { %v445_v34 = vadd.f32 %v911_v18, %v444_v30 }
 0x31f   :  { %v449_v39 = vsel %vm448_vm5, %v911_v18, %v445_v34 }
 0x320   :  { %v454_v41 = vsel %vm451_vm6, %v453_v37, %v449_v39  ;;  %vm765_vm6 = vcmask 130048  }
 0x321   :  { %v455_v43 = vmul.f32 %v1194_v23, %v454_v41  ;;  %v489_v23 = vmul.f32 %v1226_v28, %v488_v45 }
 0x323   :  { %847 = vmatmul.msk.f32.vlgmr.msrb.gmra.mxu1 %vm132_vm1, %v455_v43  ;;  %v490_v54 = vadd.f32 %v1226_v28, %v489_v23 }
 0x324   :  { %v407_v46 = vpop.xlane.xlu2 %406 }
 0x325   :  { %914 = vrcp.f32 %v407_v46  ;;  %v512_v62 = vand.u32 2147483648, %v407_v46  ;;  %v494_v63 = vsel %vm1250_vm14, %v1226_v28, %v490_v54  ;;  %v510_v2 = vand.u32 2147483647, %v407_v46 }
 0x326   :  { %vm506_vm3 = vweird.f32 %v407_v46  ;;  %v499_v57 = vsel %vm496_vm2, %v498_v3, %v494_v63 }
 0x327   :  { %v714_v49 = vpop.permute.xlu1 %713  ;;  %v513_v5 = vor.u32 1.1754944e-38, %v512_v62  ;;  %vm511_vm5 = vcmp.eq.f32.partialorder %v510_v2, 8.507059e+37  ;;  %v500_v10 = vmul.f32 %v1196_v24, %v499_v57 }
 0x328   :  { %734 = vmatpush.msra.mxu2 %v714_v49 }
 0x329   :  { %852 = vmatmul.msk.f32.vlgmr.msra.gmra.mxu2 %vm132_vm1, %v530_v50 }
 0x32b   :  { %v915_v53 = vpop.eup %914 }
 0x32c   :  { %v502_v55 = vmul.f32 %v915_v53, %v407_v46  ;;  %v881_v56 = vpop.permute.xlu2 %880  ;;  %vm507_vm15 = vweird.f32 %v915_v53 }
 0x32d   :  { %v883_v9 = vunpack.i.h.bf16 %v881_v56  ;;  %v882_v17 = vunpack.i.l.bf16 %v881_v56  ;;  %vm508_vm4 = vmor %vm506_vm3, %vm507_vm15 }
 0x32e   :  { %v503_v59 = vsub.f32 1.0, %v502_v55 }
 0x32f   :  { %578 = vmatpush.msra.mxu0 %v882_v17  ;;  %708 = vmatpush.msra.mxu1 %v883_v9 }
 0x330   :  { %v504_v1 = vmul.f32 %v915_v53, %v503_v59  ;;  %846 = vmatmul.msk.f32.vlgmr.msra.gmra.mxu0 %vm132_vm1, %v440_v60 }
 0x331   :  { %682 = vmatpush.msrb.mxu0 %v662_v0 }
 0x332   :  { %v505_v19 = vadd.f32 %v915_v53, %v504_v1 }
 0x333   :  { %v554_v12 = vpop.f32.mrf.mxu3 }
 0x334   :  { %v509_v6 = vsel %vm508_vm4, %v915_v53, %v505_v19 }
 0x335   :  { %v514_v8 = vsel %vm511_vm5, %v513_v5, %v509_v6 }
 0x336   :  { %v515_v11 = vmul.f32 %v1205_v42, %v514_v8  ;;  %v774_v42 = vld [vmem:[#allocation7 + $0x18] sm:$0xff] }
 0x337   :  { %793 = vmatpush.msrb.mxu3 %v774_v42 }
 0x338   :  { %850 = vmatmul.msk.f32.vlgmr.msrb.gmra.mxu0 %vm132_vm1, %v500_v10  ;;  %851 = vmatmul.msk.f32.vlgmr.msra.gmra.mxu1 %vm132_vm1, %v515_v11 }
 0x339   :  { %794 = vmatpush.msrb.mxu3 %v773_v25 }
 0x33b   :  { %795 = vmatpush.msrb.mxu3 %v772_v26 }
 0x33d   :  { %796 = vmatpush.msrb.mxu3 %v771_v27 }
 0x37b   :  { %v658_v15 = vpop.f32.mrf.mxu3 }
 0x37c   :  { %749 = vrot.lane.b32.xlu0 %v658_v15, %s1055_s12 }
 0x396   :  { %v632_v18 = vpop.f32.mrf.mxu2 }
 0x3a0   :  { %v606_v16 = vpop.f32.mrf.mxu1 }
 0x3a1   :  { %741 = vrot.lane.b32.xlu1 %v606_v16, %s1046_s24 }
 0x3a9   :  { %743 = vrot.lane.b32.xlu1 %v632_v18, %s1046_s24 }
 0x3ac   :  { %v736_v24 = vpop.f32.mrf.mxu2 }
 0x3ad   :  { %v580_v20 = vpop.f32.mrf.mxu0 }
 0x3b5   :  { %v684_v21 = vpop.f32.mrf.mxu0  ;;  %v710_v22 = vpop.f32.mrf.mxu1 }
 0x3b6   :  { %757 = vrot.lane.b32.xlu2 %v710_v22, %s1056_s13  ;;  %751 = vrot.lane.b32.xlu0 %v684_v21, %s1055_s12 }
 0x3be   :  { %759 = vrot.lane.b32.xlu2 %v736_v24, %s1056_s13 }
 0x3ee   :  { %v750_v29 = vpop.permute.xlu0 %749 }
 0x410   :  { %v758_v4 = vpop.permute.xlu2 %757 }
 0x413   :  { %v742_v28 = vpop.permute.xlu1 %741 }
 0x414   :  { %v763_v30 = vsel %vm132_vm1, %v554_v12, %v742_v28 }
 0x415   :  { %v766_v31 = vsel %vm765_vm6, %v763_v30, %v750_v29 }
 0x416   :  { %v769_v32 = vsel %vm768_vm7, %v766_v31, %v758_v4 }
 0x417   :  { %853 = vmatmul.msk.f32.vlgmr.msrb.gmra.mxu3 %vm85_vm0, %v769_v32 }
 0x418   :  { %v760_v36 = vpop.permute.xlu2 %759 }
 0x41b   :  { %v744_v33 = vpop.permute.xlu1 %743 }
 0x41c   :  { %v764_v34 = vsel %vm132_vm1, %v580_v20, %v744_v33 }
 0x428   :  { %v752_v35 = vpop.permute.xlu0 %751 }
 0x429   :  { %v767_v37 = vsel %vm765_vm6, %v764_v34, %v752_v35 }
 0x42a   :  { %v770_v38 = vsel %vm768_vm7, %v767_v37, %v760_v36 }
 0x42b   :  { %854 = vmatmul.msk.f32.gmra.mxu3 %vm85_vm0, %v770_v38 }
 0x49a   :  { %v798_v39 = vpop.f32.mrf.mxu3 }
 0x49b   :  { %804 = vst.msk [vmem:[#allocation10] sm:$0xff] %vm85_vm0, %v798_v39 }
 0x4ae   :  { %v801_v40 = vpop.f32.mrf.mxu3 }
 0x4af   :  { %805 = vst.msk [vmem:[#allocation10 + $0x8] sm:$0xff] %vm85_vm0, %v801_v40 }
 0x4b0   :  { %818 = dma.vmem_to_hbm [thread:$0]  %s811_s15, 256, %s813_s18, [#allocation4], %s1045_s23, %s1045_s23, %s1046_s24  }
 0x4b1   :  { %1042 = dma.done.wait [#allocation4], 256  }
 0x4b2   :  { %1043 = vsyncadd [#allocation4], 4294967040 }
 0x4b3   :  { %823 = vsyncpa [#allocation3], 1 }
 0x4b4   :  { %824 = vsyncpa [#allocation6], 1 }
 0x4b5   :  { %825 = vsyncpa [#allocation9], 1 }
 0x4b6   :  { %826 = vsyncpa [#allocation4], 1 }

</bundles_post_ra>
